<compile_context>
chip_gen: v5e
topology: v5e:2x2
jax: 0.10.0
libtpu: 0.0.40
codegen_flags: <defaults>
</compile_context>

<pallas_src>
import functools

import jax
import jax.numpy as jnp
from jax.experimental import pallas as pl
from jax.experimental.pallas import tpu as pltpu

LANE = 128
TARGET_BLOCK_BYTES = 2 * 1024 * 1024   # per f32 stream per pipeline buffer
NUM_CORE_SLICES = 2                    # v7x has 2 TCs; a no-op split on v5e/v6e


def _bilinear_align_corners(x, out_hw):
    """PyTorch F.interpolate(mode='bilinear', align_corners=True) on NCHW."""
    # TODO(synk): resize stays in plain JAX (gather-based); no Pallas win at these sizes.
    B, C, H, W = x.shape
    Ht, Wt = out_hw
    if (H, W) == (Ht, Wt):
        return x

    def coords(out_n, in_n):
        if out_n == 1:
            return jnp.zeros((1,), jnp.float32)
        return jnp.arange(out_n, dtype=jnp.float32) * ((in_n - 1) / (out_n - 1))

    ys = coords(Ht, H)
    xs = coords(Wt, W)
    y0 = jnp.clip(jnp.floor(ys).astype(jnp.int32), 0, H - 1)
    y1 = jnp.clip(y0 + 1, 0, H - 1)
    x0 = jnp.clip(jnp.floor(xs).astype(jnp.int32), 0, W - 1)
    x1 = jnp.clip(x0 + 1, 0, W - 1)
    wy = (ys - y0.astype(jnp.float32))[:, None]   # (Ht, 1)
    wx = (xs - x0.astype(jnp.float32))[None, :]   # (1, Wt)

    def gather(yi, xi):
        return x[:, :, yi[:, None], xi[None, :]]  # (B, C, Ht, Wt)

    top = gather(y0, x0) * (1.0 - wx) + gather(y0, x1) * wx
    bot = gather(y1, x0) * (1.0 - wx) + gather(y1, x1) * wx
    return top * (1.0 - wy) + bot * wy


def _silog_kernel(*refs, has_mask, block_rows, acc_rows, width, steps,
                  total_rows, first_masked_block, padded_blocks):
    """Streams (block_rows, width) tiles, accumulating per-slice vector partials."""
    if has_mask:
        x_ref, t_ref, m_ref, og_ref, ogg_ref, ow_ref = refs
    else:
        x_ref, t_ref, og_ref, ogg_ref = refs
        m_ref = None
        ow_ref = None

    c = pl.program_id(0)   # core slice ("parallel")
    s = pl.program_id(1)   # streaming step ("arbitrary")

    @pl.when(s == 0)
    def _init():
        og_ref[...] = jnp.zeros_like(og_ref)
        ogg_ref[...] = jnp.zeros_like(ogg_ref)
        if has_mask:
            ow_ref[...] = jnp.zeros_like(ow_ref)

    def fold(v):
        # Collapse the block to an (acc_rows, width) partial with vreg adds only
        # (leading-dim split keeps (8,128) tiles intact; acc_rows=64 gives ILP).
        if block_rows == acc_rows:
            return v
        return jnp.sum(v.reshape(block_rows // acc_rows, acc_rows, width), axis=0)

    def accumulate(row_mask_needed):
        x = x_ref[...].astype(jnp.float32)
        t = t_ref[...].astype(jnp.float32)
        valid = None
        if has_mask:
            valid = m_ref[...] != 0
        if row_mask_needed:
            gb = c * steps + s
            row = jax.lax.broadcasted_iota(jnp.int32, (block_rows, width), 0)
            row_ok = (gb * block_rows + row) < total_rows
            valid = row_ok if valid is None else jnp.logical_and(valid, row_ok)
        if valid is not None:
            # Masked / OOB elements never reach the log (matches bool indexing).
            x = jnp.where(valid, x, 1.0)
            t = jnp.where(valid, t, 1.0)
        g = jnp.log(x) - jnp.log(t)          # 0 where invalid
        og_ref[...] += fold(g)
        ogg_ref[...] += fold(g * g)
        if has_mask:
            ow_ref[...] += fold(valid.astype(jnp.float32))

    if first_masked_block >= padded_blocks:
        # Every block is fully in-bounds: pure fast path, no iota/bounds work.
        accumulate(row_mask_needed=False)
    else:
        gb = c * steps + s
        needs_row_mask = gb >= first_masked_block

        @pl.when(jnp.logical_not(needs_row_mask))
        def _interior():
            accumulate(row_mask_needed=False)

        @pl.when(needs_row_mask)
        def _edge():   # ragged last block and/or phantom block of the core split
            accumulate(row_mask_needed=True)


def _flatten_2d(arr):
    """Free (bitcast) 2D view: (N/128, 128) if possible, else (N/W, W)."""
    n = arr.size
    if n % LANE == 0:
        return arr.reshape(n // LANE, LANE)
    w = arr.shape[-1]
    return arr.reshape(n // w, w)


@functools.partial(jax.jit, static_argnames=("interpolate", "max_block_rows"))
def silog_loss(inp, target, mask=None, interpolate=True, max_block_rows=None):
    """SILogLoss.forward: returns a scalar float32 loss."""
    if interpolate:
        inp = _bilinear_align_corners(inp, target.shape[-2:])

    t2d = _flatten_2d(target)              # native dtype, free reshape
    x2d = inp.reshape(t2d.shape)           # native dtype, free reshape
    R, W = t2d.shape
    n = R * W

    has_mask = mask is not None
    args = [x2d, t2d]
    if has_mask:
        # TODO(synk): stream the bool mask directly once bool refs are universally
        # supported by the TPU lowering; int8 keeps compilation safe at the cost
        # of one cheap fused (mask != 0).astype(int8) pass.
        m2d = (mask.reshape(t2d.shape) != 0).astype(jnp.int8)
        args.append(m2d)

    # ---- block sizing -------------------------------------------------------
    w_pad = -(-W // LANE) * LANE                       # VMEM lane footprint
    if max_block_rows is None:
        block_rows = max(64, (TARGET_BLOCK_BYTES // (w_pad * 4)) // 64 * 64)
    else:
        block_rows = max(32, (max_block_rows // 32) * 32)   # int8/f32 sublane safe
    if block_rows >= R:
        block_rows = R                                 # full extent: always legal

    total_blocks = -(-R // block_rows)
    slices = NUM_CORE_SLICES if total_blocks >= NUM_CORE_SLICES else 1
    steps = -(-total_blocks // slices)
    padded_blocks = slices * steps
    last_block = total_blocks - 1
    ragged_rows = (R % block_rows) != 0
    first_masked_block = (total_blocks - 1) if ragged_rows else total_blocks

    if block_rows % 64 == 0:
        acc_rows = 64
    elif block_rows % 32 == 0:
        acc_rows = 32
    elif block_rows % 8 == 0:
        acc_rows = 8
    else:
        acc_rows = block_rows

    # ---- specs --------------------------------------------------------------
    if padded_blocks == total_blocks:
        in_idx = lambda c, s: (c * steps + s, 0)
    else:
        # Clamp phantom steps to the last real block (their contribution is
        # masked to zero in-kernel).
        in_idx = lambda c, s: (jnp.minimum(c * steps + s, last_block), 0)
    out_idx = lambda c, s: (c, 0, 0)

    tile = pl.BlockSpec((block_rows, W), in_idx)
    in_specs = [tile, tile] + ([tile] if has_mask else [])

    n_out = 3 if has_mask else 2
    out_shape = tuple(jax.ShapeDtypeStruct((slices, acc_rows, W), jnp.float32)
                      for _ in range(n_out))
    out_specs = tuple(pl.BlockSpec((None, acc_rows, W), out_idx)
                      for _ in range(n_out))

    kernel = functools.partial(
        _silog_kernel,
        has_mask=has_mask,
        block_rows=block_rows,
        acc_rows=acc_rows,
        width=W,
        steps=steps,
        total_rows=R,
        first_masked_block=first_masked_block,
        padded_blocks=padded_blocks,
    )

    partials = pl.pallas_call(
        kernel,
        out_shape=out_shape,
        grid_spec=pltpu.PrefetchScalarGridSpec(
            num_scalar_prefetch=0,
            grid=(slices, steps),
            in_specs=in_specs,
            out_specs=out_specs,
        ),
        compiler_params=pltpu.CompilerParams(
            dimension_semantics=("parallel", "arbitrary"),
            vmem_limit_bytes=32 * 1024 * 1024,
        ),
    )(*args)

    # ---- tiny finalize in plain JAX (combines per-slice partials) -----------
    if has_mask:
        g_part, gg_part, w_part = partials
        cnt = jnp.sum(w_part)
    else:
        g_part, gg_part = partials
        cnt = jnp.float32(n)

    s1 = jnp.sum(g_part)
    s2 = jnp.sum(gg_part)
    mean = s1 / cnt
    var = (s2 - s1 * s1 / cnt) / (cnt - 1.0)   # torch.var default: unbiased (N-1)
    dg = var + 0.15 * mean * mean
    return 10.0 * jnp.sqrt(dg)


def _reference(inp, target, mask=None, interpolate=True):
    """Pure-JAX reference mirroring the PyTorch module (two-pass variance)."""
    if interpolate:
        inp = _bilinear_align_corners(inp, target.shape[-2:])
    inp = inp.reshape(-1)
    target = target.reshape(-1)
    if mask is not None:
        m = mask.reshape(-1)
        g = jnp.where(m, jnp.log(jnp.where(m, inp, 1.0)) - jnp.log(jnp.where(m, target, 1.0)), 0.0)
        cnt = jnp.sum(m.astype(jnp.float32))
        mean = jnp.sum(g) / cnt
        var = jnp.sum(jnp.where(m, (g - mean) ** 2, 0.0)) / (cnt - 1.0)
    else:
        g = jnp.log(inp) - jnp.log(target)
        mean = jnp.mean(g)
        var = jnp.var(g, ddof=1)
    dg = var + 0.15 * mean ** 2
    return 10.0 * jnp.sqrt(dg)


if __name__ == "__main__":
    key = jax.random.PRNGKey(0)
    ks = jax.random.split(key, 10)

    def check(inp, tgt, msk, **kw):
        for m in (msk, None):
            got = jax.block_until_ready(silog_loss(inp, tgt, mask=m, interpolate=True, **kw))
            want = _reference(inp, tgt, mask=m, interpolate=True)
            assert jnp.allclose(got, want, rtol=1e-3, atol=1e-3), (m is None, got, want)

    # 1) Typical depth setup: low-res prediction, hi-res target, bool mask.
    inp = jax.random.uniform(ks[0], (2, 1, 16, 32), jnp.float32, minval=0.1, maxval=2.0)
    target = jax.random.uniform(ks[1], (2, 1, 32, 64), jnp.float32, minval=0.1, maxval=2.0)
    mask = jax.random.uniform(ks[2], (2, 1, 32, 64)) > 0.3
    check(inp, target, mask)

    # 2) Ragged element count (n % 128 != 0): lane dim falls back to W (=40).
    inp2 = jax.random.uniform(ks[3], (2, 1, 15, 20), jnp.float32, minval=0.1, maxval=2.0)
    tgt2 = jax.random.uniform(ks[4], (2, 1, 30, 40), jnp.float32, minval=0.1, maxval=2.0)
    msk2 = jax.random.uniform(ks[5], (2, 1, 30, 40)) > 0.5
    check(inp2, tgt2, msk2)

    # 3) Multi-block path with forced tiny blocks: dual core-slice split,
    #    ragged last block and a clamped phantom block.
    inp3 = jax.random.uniform(ks[6], (2, 1, 36, 64), jnp.float32, minval=0.1, maxval=2.0)
    tgt3 = jax.random.uniform(ks[7], (2, 1, 72, 128), jnp.float32, minval=0.1, maxval=2.0)
    msk3 = jax.random.uniform(ks[8], (2, 1, 72, 128)) > 0.4
    check(inp3, tgt3, msk3, max_block_rows=32)

    # 4) Single full block with the (.., 64, W) fold path (block_rows=256, acc_rows=64).
    inp4 = jax.random.uniform(ks[9], (2, 1, 32, 32), jnp.float32, minval=0.1, maxval=2.0)
    tgt4 = jax.random.uniform(ks[0], (2, 1, 128, 128), jnp.float32, minval=0.1, maxval=2.0)
    msk4 = jax.random.uniform(ks[1], (2, 1, 128, 128)) > 0.3
    check(inp4, tgt4, msk4)

    print("KERNEL_OK")
</pallas_src>

<mosaic_0001>
module attributes {stable_mosaic.version = 11 : i64} {
  func.func @_silog_kernel(%arg0: i32, %arg1: i32, %arg2: memref<32x128xf32, #tpu.memory_space<vmem>>, %arg3: memref<32x128xf32, #tpu.memory_space<vmem>>, %arg4: memref<32x128xi8, #tpu.memory_space<vmem>>, %arg5: memref<1x32x128xf32, #tpu.memory_space<vmem>>, %arg6: memref<1x32x128xf32, #tpu.memory_space<vmem>>, %arg7: memref<1x32x128xf32, #tpu.memory_space<vmem>>) attributes {dimension_semantics = [#tpu.dimension_semantics<parallel>, #tpu.dimension_semantics<arbitrary>], iteration_bounds = array<i64: 1, 1>, scalar_prefetch = 0 : i64, scratch_operands = 0 : i64, tpu.core_type = #tpu.core_type<tc>, window_params = [{transform_indices = @transform_0, window_bounds = array<i64: 32, 128>}, {transform_indices = @transform_1, window_bounds = array<i64: 32, 128>}, {transform_indices = @transform_2, window_bounds = array<i64: 32, 128>}, {transform_indices = @transform_3, window_bounds = array<i64: 1, 32, 128>}, {transform_indices = @transform_4, window_bounds = array<i64: 1, 32, 128>}, {transform_indices = @transform_5, window_bounds = array<i64: 1, 32, 128>}]} {
    %c0_i32 = arith.constant 0 : i32
    %0 = arith.cmpi eq, %arg1, %c0_i32 : i32
    %1 = arith.extui %0 : i1 to i32
    %c0_i32_0 = arith.constant 0 : i32
    %2 = arith.cmpi ne, %1, %c0_i32_0 : i32
    scf.if %2 {
      %cst_25 = arith.constant 0.000000e+00 : f32
      %36 = vector.broadcast %cst_25 : f32 to vector<32x128xf32>
      %c0_26 = arith.constant 0 : index
      %c0_27 = arith.constant 0 : index
      %c0_28 = arith.constant 0 : index
      %37 = vector.load %arg5[%c0_26, %c0_27, %c0_28] : memref<1x32x128xf32, #tpu.memory_space<vmem>>, vector<1x32x128xf32>
      %38 = vector.shape_cast %37 : vector<1x32x128xf32> to vector<32x128xf32>
      %39 = vector.shape_cast %36 : vector<32x128xf32> to vector<1x32x128xf32>
      tpu.vector_store %arg5[%c0_26, %c0_27, %c0_28], %39 {strides = array<i32>} : memref<1x32x128xf32, #tpu.memory_space<vmem>>, vector<1x32x128xf32>,
      %cst_29 = arith.constant 0.000000e+00 : f32
      %40 = vector.broadcast %cst_29 : f32 to vector<32x128xf32>
      %c0_30 = arith.constant 0 : index
      %c0_31 = arith.constant 0 : index
      %c0_32 = arith.constant 0 : index
      %41 = vector.load %arg6[%c0_30, %c0_31, %c0_32] : memref<1x32x128xf32, #tpu.memory_space<vmem>>, vector<1x32x128xf32>
      %42 = vector.shape_cast %41 : vector<1x32x128xf32> to vector<32x128xf32>
      %43 = vector.shape_cast %40 : vector<32x128xf32> to vector<1x32x128xf32>
      tpu.vector_store %arg6[%c0_30, %c0_31, %c0_32], %43 {strides = array<i32>} : memref<1x32x128xf32, #tpu.memory_space<vmem>>, vector<1x32x128xf32>,
      %cst_33 = arith.constant 0.000000e+00 : f32
      %44 = vector.broadcast %cst_33 : f32 to vector<32x128xf32>
      %c0_34 = arith.constant 0 : index
      %c0_35 = arith.constant 0 : index
      %c0_36 = arith.constant 0 : index
      %45 = vector.load %arg7[%c0_34, %c0_35, %c0_36] : memref<1x32x128xf32, #tpu.memory_space<vmem>>, vector<1x32x128xf32>
      %46 = vector.shape_cast %45 : vector<1x32x128xf32> to vector<32x128xf32>
      %47 = vector.shape_cast %44 : vector<32x128xf32> to vector<1x32x128xf32>
      tpu.vector_store %arg7[%c0_34, %c0_35, %c0_36], %47 {strides = array<i32>} : memref<1x32x128xf32, #tpu.memory_space<vmem>>, vector<1x32x128xf32>,
    } else {
    }
    %c0 = arith.constant 0 : index
    %c0_1 = arith.constant 0 : index
    %3 = vector.load %arg2[%c0, %c0_1] : memref<32x128xf32, #tpu.memory_space<vmem>>, vector<32x128xf32>
    %c0_2 = arith.constant 0 : index
    %c0_3 = arith.constant 0 : index
    %4 = vector.load %arg3[%c0_2, %c0_3] : memref<32x128xf32, #tpu.memory_space<vmem>>, vector<32x128xf32>
    %c0_4 = arith.constant 0 : index
    %c0_5 = arith.constant 0 : index
    %5 = vector.load %arg4[%c0_4, %c0_5] : memref<32x128xi8, #tpu.memory_space<vmem>>, vector<32x128xi8>
    %c0_i8 = arith.constant 0 : i8
    %6 = vector.broadcast %c0_i8 : i8 to vector<32x128xi8>
    %7 = arith.cmpi ne, %5, %6 : vector<32x128xi8>
    %cst = arith.constant 1.000000e+00 : f32
    %8 = vector.broadcast %cst : f32 to vector<32x128xf32>
    %9 = arith.select %7, %3, %8 : vector<32x128xi1>, vector<32x128xf32>
    %cst_6 = arith.constant 1.000000e+00 : f32
    %10 = vector.broadcast %cst_6 : f32 to vector<32x128xf32>
    %11 = arith.select %7, %4, %10 : vector<32x128xi1>, vector<32x128xf32>
    %12 = math.log %9 : vector<32x128xf32>
    %13 = math.log %11 : vector<32x128xf32>
    %14 = arith.subf %12, %13 : vector<32x128xf32>
    %c0_7 = arith.constant 0 : index
    %c0_8 = arith.constant 0 : index
    %c0_9 = arith.constant 0 : index
    %15 = vector.load %arg5[%c0_7, %c0_8, %c0_9] : memref<1x32x128xf32, #tpu.memory_space<vmem>>, vector<1x32x128xf32>
    %16 = vector.shape_cast %15 : vector<1x32x128xf32> to vector<32x128xf32>
    %17 = arith.addf %16, %14 : vector<32x128xf32>
    %c0_10 = arith.constant 0 : index
    %c0_11 = arith.constant 0 : index
    %c0_12 = arith.constant 0 : index
    %18 = vector.load %arg5[%c0_10, %c0_11, %c0_12] : memref<1x32x128xf32, #tpu.memory_space<vmem>>, vector<1x32x128xf32>
    %19 = vector.shape_cast %18 : vector<1x32x128xf32> to vector<32x128xf32>
    %20 = vector.shape_cast %17 : vector<32x128xf32> to vector<1x32x128xf32>
    tpu.vector_store %arg5[%c0_10, %c0_11, %c0_12], %20 {strides = array<i32>} : memref<1x32x128xf32, #tpu.memory_space<vmem>>, vector<1x32x128xf32>,
    %c0_13 = arith.constant 0 : index
    %c0_14 = arith.constant 0 : index
    %c0_15 = arith.constant 0 : index
    %21 = vector.load %arg6[%c0_13, %c0_14, %c0_15] : memref<1x32x128xf32, #tpu.memory_space<vmem>>, vector<1x32x128xf32>
    %22 = vector.shape_cast %21 : vector<1x32x128xf32> to vector<32x128xf32>
    %23 = arith.mulf %14, %14 : vector<32x128xf32>
    %24 = arith.addf %22, %23 : vector<32x128xf32>
    %c0_16 = arith.constant 0 : index
    %c0_17 = arith.constant 0 : index
    %c0_18 = arith.constant 0 : index
    %25 = vector.load %arg6[%c0_16, %c0_17, %c0_18] : memref<1x32x128xf32, #tpu.memory_space<vmem>>, vector<1x32x128xf32>
    %26 = vector.shape_cast %25 : vector<1x32x128xf32> to vector<32x128xf32>
    %27 = vector.shape_cast %24 : vector<32x128xf32> to vector<1x32x128xf32>
    tpu.vector_store %arg6[%c0_16, %c0_17, %c0_18], %27 {strides = array<i32>} : memref<1x32x128xf32, #tpu.memory_space<vmem>>, vector<1x32x128xf32>,
    %c0_19 = arith.constant 0 : index
    %c0_20 = arith.constant 0 : index
    %c0_21 = arith.constant 0 : index
    %28 = vector.load %arg7[%c0_19, %c0_20, %c0_21] : memref<1x32x128xf32, #tpu.memory_space<vmem>>, vector<1x32x128xf32>
    %29 = vector.shape_cast %28 : vector<1x32x128xf32> to vector<32x128xf32>
    %30 = arith.extui %7 : vector<32x128xi1> to vector<32x128xi32>
    %31 = arith.sitofp %30 : vector<32x128xi32> to vector<32x128xf32>
    %32 = arith.addf %29, %31 : vector<32x128xf32>
    %c0_22 = arith.constant 0 : index
    %c0_23 = arith.constant 0 : index
    %c0_24 = arith.constant 0 : index
    %33 = vector.load %arg7[%c0_22, %c0_23, %c0_24] : memref<1x32x128xf32, #tpu.memory_space<vmem>>, vector<1x32x128xf32>
    %34 = vector.shape_cast %33 : vector<1x32x128xf32> to vector<32x128xf32>
    %35 = vector.shape_cast %32 : vector<32x128xf32> to vector<1x32x128xf32>
    tpu.vector_store %arg7[%c0_22, %c0_23, %c0_24], %35 {strides = array<i32>} : memref<1x32x128xf32, #tpu.memory_space<vmem>>, vector<1x32x128xf32>,
    return
  }
  func.func @transform_0(%arg0: i32, %arg1: i32) -> (i32, i32) {
    %c1_i32 = arith.constant 1 : i32
    %0 = arith.muli %arg0, %c1_i32 : i32
    %1 = arith.addi %0, %arg1 : i32
    %c0_i32 = arith.constant 0 : i32
    %c0_i32_0 = arith.constant 0 : i32
    return %1, %c0_i32 : i32, i32
  }
  func.func @transform_1(%arg0: i32, %arg1: i32) -> (i32, i32) {
    %c1_i32 = arith.constant 1 : i32
    %0 = arith.muli %arg0, %c1_i32 : i32
    %1 = arith.addi %0, %arg1 : i32
    %c0_i32 = arith.constant 0 : i32
    %c0_i32_0 = arith.constant 0 : i32
    return %1, %c0_i32 : i32, i32
  }
  func.func @transform_2(%arg0: i32, %arg1: i32) -> (i32, i32) {
    %c1_i32 = arith.constant 1 : i32
    %0 = arith.muli %arg0, %c1_i32 : i32
    %1 = arith.addi %0, %arg1 : i32
    %c0_i32 = arith.constant 0 : i32
    %c0_i32_0 = arith.constant 0 : i32
    return %1, %c0_i32 : i32, i32
  }
  func.func @transform_3(%arg0: i32, %arg1: i32) -> (i32, i32, i32) {
    %c0_i32 = arith.constant 0 : i32
    %c0_i32_0 = arith.constant 0 : i32
    %c0_i32_1 = arith.constant 0 : i32
    return %arg0, %c0_i32, %c0_i32_0 : i32, i32, i32
  }
  func.func @transform_4(%arg0: i32, %arg1: i32) -> (i32, i32, i32) {
    %c0_i32 = arith.constant 0 : i32
    %c0_i32_0 = arith.constant 0 : i32
    %c0_i32_1 = arith.constant 0 : i32
    return %arg0, %c0_i32, %c0_i32_0 : i32, i32, i32
  }
  func.func @transform_5(%arg0: i32, %arg1: i32) -> (i32, i32, i32) {
    %c0_i32 = arith.constant 0 : i32
    %c0_i32_0 = arith.constant 0 : i32
    %c0_i32_1 = arith.constant 0 : i32
    return %arg0, %c0_i32, %c0_i32_0 : i32, i32, i32
  }
}

</mosaic_0001>

<bundles_post_ra>
// kernel: silog_loss.1
= control target key start
LH: loop header
LB: loop body
LE: loop exit
PB: predicated region body
PF: predicated region fallthrough
CT: control target
= control target key end

     0   :  { %v263_v1 = vmov 0   ;;  %v264_v42 = vmov 0.0   ;;  %s398_s2 = inlined_call_operand.vmem [shape: s8[32,128], index: 2, kind: input, shape index: {}]   ;;  %s399_s0 = inlined_call_operand.vmem [shape: f32[32,128], index: 0, kind: input, shape index: {}]   ;;  %s400_s1 = inlined_call_operand.vmem [shape: f32[32,128], index: 1, kind: input, shape index: {}]   ;;  %s401_s5 = inlined_call_operand.vmem [shape: f32[1,32,128], index: 5, kind: output, shape index: {2}]   ;;  %s402_s3 = inlined_call_operand.vmem [shape: f32[1,32,128], index: 3, kind: output, shape index: {0}]   ;;  %s403_s4 = inlined_call_operand.vmem [shape: f32[1,32,128], index: 4, kind: output, shape index: {1}]  }
   0x1   :  { %v104_v0 = vld [vmem:[%s398_s2] sm:$0xff]  ;;  %v97_v21 = vld [vmem:[%s399_s0 + $0x8] sm:$0xff]  ;;  %v98_v26 = vld [vmem:[%s399_s0 + $0x10] sm:$0xff] }
   0x2   :  { %vm105_vm0 = vnez %v104_v0  ;;  %v96_v18 = vld [vmem:[%s399_s0] sm:$0xff]  ;;  %v101_v25 = vld [vmem:[%s400_s1 + $0x8] sm:$0xff]  ;;  %v102_v30 = vld [vmem:[%s400_s1 + $0x10] sm:$0xff] }
   0x3   :  { %v106_v2 = vsel %vm105_vm0, 16843009, %v263_v1  ;;  %v100_v19 = vld [vmem:[%s400_s1] sm:$0xff]  ;;  %v99_v32 = vld [vmem:[%s399_s0 + $0x18] sm:$0xff] }
   0x4   :  { %v107_v3 = vunpack.c.0.s8 %v106_v2  ;;  %v108_v4 = vunpack.c.1.s8 %v106_v2  ;;  %v109_v5 = vunpack.c.2.s8 %v106_v2  ;;  %v110_v6 = vunpack.c.3.s8 %v106_v2  ;;  %v103_v40 = vld [vmem:[%s400_s1 + $0x18] sm:$0xff] }
   0x6   :  { %v111_v7 = vpack.c.b16 %v107_v3, %v107_v3  ;;  %v113_v8 = vpack.c.b16 %v108_v4, %v108_v4  ;;  %v115_v9 = vpack.c.b16 %v109_v5, %v109_v5  ;;  %v117_v10 = vpack.c.b16 %v110_v6, %v110_v6 }
   0x8   :  { %v112_v11 = vpack.c.b8 %v111_v7, %v111_v7  ;;  %v114_v12 = vpack.c.b8 %v113_v8, %v113_v8  ;;  %v116_v13 = vpack.c.b8 %v115_v9, %v115_v9  ;;  %v118_v14 = vpack.c.b8 %v117_v10, %v117_v10 }
   0xa   :  { %vm119_vm1 = vnez %v112_v11  ;;  %vm120_vm2 = vnez %v114_v12  ;;  %vm121_vm3 = vnez %v116_v13  ;;  %vm122_vm4 = vnez %v118_v14 }
   0xb   :  { %v123_v15 = vsel %vm119_vm1, 16843009, %v263_v1  ;;  %v124_v16 = vsel %vm120_vm2, 16843009, %v263_v1  ;;  %v125_v17 = vsel %vm121_vm3, 16843009, %v263_v1 }
   0xc   :  { %v127_v20 = vunpack.c.0.s8 %v123_v15  ;;  %v128_v22 = vunpack.c.0.s8 %v124_v16  ;;  %v129_v23 = vunpack.c.0.s8 %v125_v17  ;;  %v126_v24 = vsel %vm122_vm4, 16843009, %v263_v1 }
   0xd   :  { %v130_v27 = vunpack.c.0.s8 %v126_v24 }
   0xe   :  { %vm313_vm5 = vcmp.ne.s32.totalorder %v127_v20, 0  ;;  %vm317_vm6 = vcmp.ne.s32.totalorder %v128_v22, 0  ;;  %vm324_vm7 = vcmp.ne.s32.totalorder %v129_v23, 0 }
   0xf   :  { %v135_v33 = vsel %vm313_vm5, %v96_v18, 1.0  ;;  %v139_v34 = vsel %vm313_vm5, %v100_v19, 1.0  ;;  %v136_v35 = vsel %vm317_vm6, %v97_v21, 1.0  ;;  %v140_v36 = vsel %vm317_vm6, %v101_v25, 1.0 }
  0x10   :  { %247 = vlog2.f32 %v135_v33  ;;  %v137_v37 = vsel %vm324_vm7, %v98_v26, 1.0  ;;  %vm341_vm8 = vcmp.ne.s32.totalorder %v130_v27, 0  ;;  %v141_v39 = vsel %vm324_vm7, %v102_v30, 1.0 }
  0x11   :  { %249 = vlog2.f32 %v139_v34  ;;  %v138_v41 = vsel %vm341_vm8, %v99_v32, 1.0  ;;  %v241_v43 = vsel %vm313_vm5, 1.0, %v264_v42  ;;  %v242_v44 = vsel %vm317_vm6, 1.0, %v264_v42 }
  0x12   :  { %251 = vlog2.f32 %v136_v35  ;;  %v243_v45 = vsel %vm324_vm7, 1.0, %v264_v42  ;;  %v244_v46 = vsel %vm341_vm8, 1.0, %v264_v42  ;;  %v142_v47 = vsel %vm341_vm8, %v103_v40, 1.0  ;;  %207 = vst [vmem:[%s401_s5] sm:$0xff] %v241_v43 }
  0x13   :  { %253 = vlog2.f32 %v140_v36  ;;  %208 = vst [vmem:[%s401_s5 + $0x8] sm:$0xff] %v242_v44 }
  0x14   :  { %255 = vlog2.f32 %v137_v37  ;;  %209 = vst [vmem:[%s401_s5 + $0x10] sm:$0xff] %v243_v45 }
  0x15   :  { %257 = vlog2.f32 %v141_v39  ;;  %210 = vst [vmem:[%s401_s5 + $0x18] sm:$0xff] %v244_v46 }
  0x16   :  { %v248_v48 = vpop.eup %247  ;;  %259 = vlog2.f32 %v138_v41 }
  0x17   :  { %v250_v49 = vpop.eup %249  ;;  %v144_v50 = vmul.f32 0.6931472, %v248_v48  ;;  %261 = vlog2.f32 %v142_v47 }
  0x18   :  { %v252_v51 = vpop.eup %251  ;;  %v152_v52 = vmul.f32 0.6931472, %v250_v49 }
  0x19   :  { %v254_v53 = vpop.eup %253  ;;  %v146_v54 = vmul.f32 0.6931472, %v252_v51 }
  0x1a   :  { %v256_v55 = vpop.eup %255  ;;  %v159_v56 = vsub.f32 %v144_v50, %v152_v52  ;;  %v154_v57 = vmul.f32 0.6931472, %v254_v53 }
  0x1b   :  { %v258_v58 = vpop.eup %257  ;;  %v148_v59 = vmul.f32 0.6931472, %v256_v55 }
  0x1c   :  { %v260_v60 = vpop.eup %259  ;;  %v160_v61 = vsub.f32 %v146_v54, %v154_v57  ;;  %v156_v62 = vmul.f32 0.6931472, %v258_v58  ;;  %v179_v63 = vmul.f32 %v159_v56, %v159_v56  ;;  %171 = vst [vmem:[%s402_s3] sm:$0xff] %v159_v56 }
  0x1d   :  { %v262_v0 = vpop.eup %261  ;;  %v150_v1 = vmul.f32 0.6931472, %v260_v60 }
  0x1e   :  { %v161_v2 = vsub.f32 %v148_v59, %v156_v62  ;;  %v158_v3 = vmul.f32 0.6931472, %v262_v0  ;;  %v180_v4 = vmul.f32 %v160_v61, %v160_v61  ;;  %172 = vst [vmem:[%s402_s3 + $0x8] sm:$0xff] %v160_v61 }
  0x1f   :  { %187 = vst [vmem:[%s403_s4] sm:$0xff] %v179_v63 }
  0x20   :  { %v162_v5 = vsub.f32 %v150_v1, %v158_v3  ;;  %v181_v6 = vmul.f32 %v161_v2, %v161_v2  ;;  %173 = vst [vmem:[%s402_s3 + $0x10] sm:$0xff] %v161_v2 }
  0x21   :  { %188 = vst [vmem:[%s403_s4 + $0x8] sm:$0xff] %v180_v4 }
  0x22   :  { %v182_v7 = vmul.f32 %v162_v5, %v162_v5  ;;  %174 = vst [vmem:[%s402_s3 + $0x18] sm:$0xff] %v162_v5 }
  0x23   :  { %189 = vst [vmem:[%s403_s4 + $0x10] sm:$0xff] %v181_v6 }
  0x24   :  { %190 = vst [vmem:[%s403_s4 + $0x18] sm:$0xff] %v182_v7 }

</bundles_post_ra>
